<compile_context>
chip_gen: v7x
topology: tpu7x:2x2x1
jax: 0.10.0
libtpu: 0.0.40
codegen_flags: <defaults>
</compile_context>

<pallas_src>
import jax
import jax.numpy as jnp
from jax.experimental import pallas as pl
from jax.experimental.pallas import tpu as pltpu


def _tree_max(vals):
    """Balanced pairwise max over a list of arrays (log2-depth VALU chain)."""
    while len(vals) > 1:
        nxt = [jnp.maximum(vals[i], vals[i + 1])
               for i in range(0, len(vals) - 1, 2)]
        if len(vals) % 2:
            nxt.append(vals[-1])
        vals = nxt
    return vals[0]


def simple_kernel(x_ref, y_ref, w1_ref, b1_ref, w2_ref, b2_ref, o_ref):
    # Fuse the two Linear layers in f32 inside the kernel:
    #   lin2(lin1(v)) = v @ (w1 @ w2) + (b1 @ w2 + b2)
    w_f = jnp.dot(w1_ref[...], w2_ref[...],
                  preferred_element_type=jnp.float32)              # (D, O)
    b_f = jnp.dot(b1_ref[...], w2_ref[...],
                  preferred_element_type=jnp.float32) + b2_ref[...]  # (1, O)

    # One small MXU push per batch row (static unroll), then a balanced max
    # tree over each branch's batch rows.  Bias folded past the max.
    ox = _tree_max([jnp.dot(x_ref[b], w_f, preferred_element_type=jnp.float32)
                    for b in range(x_ref.shape[0])])                # (S, O)
    oy = _tree_max([jnp.dot(y_ref[b], w_f, preferred_element_type=jnp.float32)
                    for b in range(y_ref.shape[0])])                # (S, O)

    o_ref[...] = ox + oy + 2.0 * b_f


def simple_forward(x, y, w1, b1, w2, b2):
    bx, s, d = x.shape
    by, sy, dy = y.shape
    assert bx >= 1 and by >= 1, "both branches need at least one batch row"
    assert (sy, dy) == (s, d), "x and y must share (seq, feature) dims"
    out_dim = w2.shape[1]

    vmem = pltpu.MemorySpace.VMEM
    return pl.pallas_call(
        simple_kernel,
        out_shape=jax.ShapeDtypeStruct((s, out_dim), jnp.float32),
        in_specs=[pl.BlockSpec(memory_space=vmem) for _ in range(6)],
        out_specs=pl.BlockSpec(memory_space=vmem),
    )(x, y, w1, b1, w2, b2)


def init_linear(key, fan_in, fan_out):
    # Deterministic init mimicking torch.nn.Linear (uniform +-1/sqrt(fan_in)).
    # Biases are kept 2-D (1, fan_out) so every kernel ref is >=2-D.
    kw, kb = jax.random.split(key)
    bound = 1.0 / jnp.sqrt(fan_in)
    w = jax.random.uniform(kw, (fan_in, fan_out), jnp.float32, -bound, bound)
    b = jax.random.uniform(kb, (1, fan_out), jnp.float32, -bound, bound)
    return w, b


if __name__ == "__main__":
    # Shapes implied by the module's driver code: x=(4,50,10), y=(5,50,10)
    input_dim, hid_dim, out_dim = 10, 32, 8
    key = jax.random.PRNGKey(0)
    kx, ky, k1, k2 = jax.random.split(key, 4)

    x = jax.random.normal(kx, (4, 50, input_dim), jnp.float32)
    y = jax.random.normal(ky, (5, 50, input_dim), jnp.float32)
    w1, b1 = init_linear(k1, input_dim, hid_dim)
    w2, b2 = init_linear(k2, hid_dim, out_dim)

    out = jax.block_until_ready(simple_forward(x, y, w1, b1, w2, b2))

    # Silent correctness check against the ORIGINAL (unfused) formulation.
    def ref(v):
        h = v @ w1 + b1
        o = h @ w2 + b2
        return jnp.max(o, axis=0)

    expected = ref(x) + ref(y)
    assert out.shape == (50, out_dim)
    assert jnp.allclose(out, expected, atol=2e-4, rtol=2e-4), \
        float(jnp.max(jnp.abs(out - expected)))

    print("KERNEL_OK")
</pallas_src>

<mosaic_0001>
module attributes {stable_mosaic.version = 11 : i64} {
  func.func @simple_kernel(%arg0: memref<4x50x10xf32, #tpu.memory_space<vmem>>, %arg1: memref<5x50x10xf32, #tpu.memory_space<vmem>>, %arg2: memref<10x32xf32, #tpu.memory_space<vmem>>, %arg3: memref<1x32xf32, #tpu.memory_space<vmem>>, %arg4: memref<32x8xf32, #tpu.memory_space<vmem>>, %arg5: memref<1x8xf32, #tpu.memory_space<vmem>>, %arg6: memref<50x8xf32, #tpu.memory_space<vmem>>) attributes {dimension_semantics = [], scalar_prefetch = 0 : i64, scratch_operands = 0 : i64, tpu.core_type = #tpu.core_type<tc>} {
    %c0 = arith.constant 0 : index
    %c0_0 = arith.constant 0 : index
    %0 = vector.load %arg2[%c0, %c0_0] : memref<10x32xf32, #tpu.memory_space<vmem>>, vector<10x32xf32>
    %c0_1 = arith.constant 0 : index
    %c0_2 = arith.constant 0 : index
    %1 = vector.load %arg4[%c0_1, %c0_2] : memref<32x8xf32, #tpu.memory_space<vmem>>, vector<32x8xf32>
    %cst = arith.constant dense<0.000000e+00> : vector<10x8xf32>
    %2 = tpu.matmul %0, %1, %cst {dimension_numbers = #tpu.dot_dimension_numbers<[1], [0], [0], [1], [0, 0, 1, 1], [], []>} : vector<10x32xf32>, vector<32x8xf32>, vector<10x8xf32> -> vector<10x8xf32>
    %c0_3 = arith.constant 0 : index
    %c0_4 = arith.constant 0 : index
    %3 = vector.load %arg3[%c0_3, %c0_4] : memref<1x32xf32, #tpu.memory_space<vmem>>, vector<1x32xf32>
    %c0_5 = arith.constant 0 : index
    %c0_6 = arith.constant 0 : index
    %4 = vector.load %arg4[%c0_5, %c0_6] : memref<32x8xf32, #tpu.memory_space<vmem>>, vector<32x8xf32>
    %cst_7 = arith.constant dense<0.000000e+00> : vector<1x8xf32>
    %5 = tpu.matmul %3, %4, %cst_7 {dimension_numbers = #tpu.dot_dimension_numbers<[1], [0], [0], [1], [0, 0, 1, 1], [], []>} : vector<1x32xf32>, vector<32x8xf32>, vector<1x8xf32> -> vector<1x8xf32>
    %c0_8 = arith.constant 0 : index
    %c0_9 = arith.constant 0 : index
    %6 = vector.load %arg5[%c0_8, %c0_9] : memref<1x8xf32, #tpu.memory_space<vmem>>, vector<1x8xf32>
    %7 = arith.addf %5, %6 : vector<1x8xf32>
    %c0_10 = arith.constant 0 : index
    %c0_11 = arith.constant 0 : index
    %c0_12 = arith.constant 0 : index
    %8 = vector.load %arg0[%c0_10, %c0_11, %c0_12] : memref<4x50x10xf32, #tpu.memory_space<vmem>>, vector<1x50x10xf32>
    %9 = vector.shape_cast %8 : vector<1x50x10xf32> to vector<50x10xf32>
    %cst_13 = arith.constant dense<0.000000e+00> : vector<50x8xf32>
    %10 = tpu.matmul %9, %2, %cst_13 {dimension_numbers = #tpu.dot_dimension_numbers<[1], [0], [0], [1], [0, 0, 1, 1], [], []>} : vector<50x10xf32>, vector<10x8xf32>, vector<50x8xf32> -> vector<50x8xf32>
    %c1 = arith.constant 1 : index
    %c0_14 = arith.constant 0 : index
    %c0_15 = arith.constant 0 : index
    %11 = vector.load %arg0[%c1, %c0_14, %c0_15] : memref<4x50x10xf32, #tpu.memory_space<vmem>>, vector<1x50x10xf32>
    %12 = vector.shape_cast %11 : vector<1x50x10xf32> to vector<50x10xf32>
    %cst_16 = arith.constant dense<0.000000e+00> : vector<50x8xf32>
    %13 = tpu.matmul %12, %2, %cst_16 {dimension_numbers = #tpu.dot_dimension_numbers<[1], [0], [0], [1], [0, 0, 1, 1], [], []>} : vector<50x10xf32>, vector<10x8xf32>, vector<50x8xf32> -> vector<50x8xf32>
    %c2 = arith.constant 2 : index
    %c0_17 = arith.constant 0 : index
    %c0_18 = arith.constant 0 : index
    %14 = vector.load %arg0[%c2, %c0_17, %c0_18] : memref<4x50x10xf32, #tpu.memory_space<vmem>>, vector<1x50x10xf32>
    %15 = vector.shape_cast %14 : vector<1x50x10xf32> to vector<50x10xf32>
    %cst_19 = arith.constant dense<0.000000e+00> : vector<50x8xf32>
    %16 = tpu.matmul %15, %2, %cst_19 {dimension_numbers = #tpu.dot_dimension_numbers<[1], [0], [0], [1], [0, 0, 1, 1], [], []>} : vector<50x10xf32>, vector<10x8xf32>, vector<50x8xf32> -> vector<50x8xf32>
    %c3 = arith.constant 3 : index
    %c0_20 = arith.constant 0 : index
    %c0_21 = arith.constant 0 : index
    %17 = vector.load %arg0[%c3, %c0_20, %c0_21] : memref<4x50x10xf32, #tpu.memory_space<vmem>>, vector<1x50x10xf32>
    %18 = vector.shape_cast %17 : vector<1x50x10xf32> to vector<50x10xf32>
    %cst_22 = arith.constant dense<0.000000e+00> : vector<50x8xf32>
    %19 = tpu.matmul %18, %2, %cst_22 {dimension_numbers = #tpu.dot_dimension_numbers<[1], [0], [0], [1], [0, 0, 1, 1], [], []>} : vector<50x10xf32>, vector<10x8xf32>, vector<50x8xf32> -> vector<50x8xf32>
    %20 = arith.maximumf %10, %13 : vector<50x8xf32>
    %21 = arith.maximumf %16, %19 : vector<50x8xf32>
    %22 = arith.maximumf %20, %21 : vector<50x8xf32>
    %c0_23 = arith.constant 0 : index
    %c0_24 = arith.constant 0 : index
    %c0_25 = arith.constant 0 : index
    %23 = vector.load %arg1[%c0_23, %c0_24, %c0_25] : memref<5x50x10xf32, #tpu.memory_space<vmem>>, vector<1x50x10xf32>
    %24 = vector.shape_cast %23 : vector<1x50x10xf32> to vector<50x10xf32>
    %cst_26 = arith.constant dense<0.000000e+00> : vector<50x8xf32>
    %25 = tpu.matmul %24, %2, %cst_26 {dimension_numbers = #tpu.dot_dimension_numbers<[1], [0], [0], [1], [0, 0, 1, 1], [], []>} : vector<50x10xf32>, vector<10x8xf32>, vector<50x8xf32> -> vector<50x8xf32>
    %c1_27 = arith.constant 1 : index
    %c0_28 = arith.constant 0 : index
    %c0_29 = arith.constant 0 : index
    %26 = vector.load %arg1[%c1_27, %c0_28, %c0_29] : memref<5x50x10xf32, #tpu.memory_space<vmem>>, vector<1x50x10xf32>
    %27 = vector.shape_cast %26 : vector<1x50x10xf32> to vector<50x10xf32>
    %cst_30 = arith.constant dense<0.000000e+00> : vector<50x8xf32>
    %28 = tpu.matmul %27, %2, %cst_30 {dimension_numbers = #tpu.dot_dimension_numbers<[1], [0], [0], [1], [0, 0, 1, 1], [], []>} : vector<50x10xf32>, vector<10x8xf32>, vector<50x8xf32> -> vector<50x8xf32>
    %c2_31 = arith.constant 2 : index
    %c0_32 = arith.constant 0 : index
    %c0_33 = arith.constant 0 : index
    %29 = vector.load %arg1[%c2_31, %c0_32, %c0_33] : memref<5x50x10xf32, #tpu.memory_space<vmem>>, vector<1x50x10xf32>
    %30 = vector.shape_cast %29 : vector<1x50x10xf32> to vector<50x10xf32>
    %cst_34 = arith.constant dense<0.000000e+00> : vector<50x8xf32>
    %31 = tpu.matmul %30, %2, %cst_34 {dimension_numbers = #tpu.dot_dimension_numbers<[1], [0], [0], [1], [0, 0, 1, 1], [], []>} : vector<50x10xf32>, vector<10x8xf32>, vector<50x8xf32> -> vector<50x8xf32>
    %c3_35 = arith.constant 3 : index
    %c0_36 = arith.constant 0 : index
    %c0_37 = arith.constant 0 : index
    %32 = vector.load %arg1[%c3_35, %c0_36, %c0_37] : memref<5x50x10xf32, #tpu.memory_space<vmem>>, vector<1x50x10xf32>
    %33 = vector.shape_cast %32 : vector<1x50x10xf32> to vector<50x10xf32>
    %cst_38 = arith.constant dense<0.000000e+00> : vector<50x8xf32>
    %34 = tpu.matmul %33, %2, %cst_38 {dimension_numbers = #tpu.dot_dimension_numbers<[1], [0], [0], [1], [0, 0, 1, 1], [], []>} : vector<50x10xf32>, vector<10x8xf32>, vector<50x8xf32> -> vector<50x8xf32>
    %c4 = arith.constant 4 : index
    %c0_39 = arith.constant 0 : index
    %c0_40 = arith.constant 0 : index
    %35 = vector.load %arg1[%c4, %c0_39, %c0_40] : memref<5x50x10xf32, #tpu.memory_space<vmem>>, vector<1x50x10xf32>
    %36 = vector.shape_cast %35 : vector<1x50x10xf32> to vector<50x10xf32>
    %cst_41 = arith.constant dense<0.000000e+00> : vector<50x8xf32>
    %37 = tpu.matmul %36, %2, %cst_41 {dimension_numbers = #tpu.dot_dimension_numbers<[1], [0], [0], [1], [0, 0, 1, 1], [], []>} : vector<50x10xf32>, vector<10x8xf32>, vector<50x8xf32> -> vector<50x8xf32>
    %38 = arith.maximumf %25, %28 : vector<50x8xf32>
    %39 = arith.maximumf %31, %34 : vector<50x8xf32>
    %40 = arith.maximumf %38, %39 : vector<50x8xf32>
    %41 = arith.maximumf %40, %37 : vector<50x8xf32>
    %42 = arith.addf %22, %41 : vector<50x8xf32>
    %cst_42 = arith.constant 2.000000e+00 : f32
    %43 = vector.broadcast %cst_42 : f32 to vector<1x8xf32>
    %44 = arith.mulf %43, %7 : vector<1x8xf32>
    %45 = vector.broadcast %44 : vector<1x8xf32> to vector<50x8xf32>
    %46 = arith.addf %42, %45 : vector<50x8xf32>
    %c0_43 = arith.constant 0 : index
    %c0_44 = arith.constant 0 : index
    %47 = vector.load %arg6[%c0_43, %c0_44] : memref<50x8xf32, #tpu.memory_space<vmem>>, vector<50x8xf32>
    tpu.vector_store %arg6[%c0_43, %c0_44], %46 {strides = array<i32>} : memref<50x8xf32, #tpu.memory_space<vmem>>, vector<50x8xf32>,
    return
  }
}

</mosaic_0001>

<bundles_post_ra>
// kernel: tpu_custom_call.1
= control target key start
LH: loop header
LB: loop body
LE: loop exit
PB: predicated region body
PF: predicated region fallthrough
CT: control target
= control target key end

     0   :  { %vm29_vm0 = vcmask 261120   ;;  %v1950_v3 = vmov 0.0|0.0   ;;  %vm1951_vm1 = vmmov 0   ;;  %v1952_v9 = vmov 0.0   ;;  %s2555_s4 = inlined_call_operand.vmem [shape: f32[32,8], index: 4, kind: input, shape index: {}]   ;;  %s2556_s2 = inlined_call_operand.vmem [shape: f32[10,32], index: 2, kind: input, shape index: {}]   ;;  %s2557_s3 = inlined_call_operand.vmem [shape: f32[1,32], index: 3, kind: input, shape index: {}]   ;;  %s2558_s0 = inlined_call_operand.vmem [shape: f32[4,50,10], index: 0, kind: input, shape index: {}]   ;;  %s2559_s1 = inlined_call_operand.vmem [shape: f32[5,50,10], index: 1, kind: input, shape index: {}]   ;;  %s2560_s5 = inlined_call_operand.vmem [shape: f32[1,8], index: 5, kind: input, shape index: {}]   ;;  %s2561_s6 = inlined_call_operand.vmem [shape: f32[50,8], index: 6, kind: output, shape index: {}]  }
   0x1   :  { %v25_v0 = vld [vmem:[%s2555_s4] sm:$0xff]  ;;  %v26_v1 = vld [vmem:[%s2555_s4 + $0x8] sm:$0xff]  ;;  %v27_v2 = vld [vmem:[%s2555_s4 + $0x10] sm:$0xff]  ;;  %1902 = vmatprep.subr.bf16.mxu1 %v1950_v3  ;;  %1666 = vmatprep.mubr.msk.f32.mxu1 %vm1951_vm1, %v1952_v9  ;;  %vm215_vm2 = vcmask 1041408   ;;  %vm1953_vm3 = vmmov 1   ;;  %vm193_vm5 = vcmask 80896  }
   0x2   :  { %v1894_v4 = vpack.c.bf16 %v26_v1, %v25_v0  ;;  %v28_v5 = vld [vmem:[%s2555_s4 + $0x18] sm:$0xff]  ;;  %v23_v6 = vld [vmem:[%s2556_s2] sm:$0xff]  ;;  %v24_v8 = vld [vmem:[%s2556_s2 + $0x8] sm:$0x3]  ;;  %vm1418_vm6 = vcmask 64512   ;;  %vm1425_vm7 = vcmask 58368  }
   0x3   :  { %v1898_v7 = vpack.c.bf16 %v28_v5, %v27_v2  ;;  %1655 = vmatprep.mubr.msk.f32.mxu0 %vm29_vm0, %v23_v6  ;;  %v111_v10 = vld [vmem:[%s2557_s3] sm:$0x1]  ;;  %vm2023_vm4 = vmpackc.low %vm215_vm2, %vm1953_vm3  ;;  %v187_v17 = vld [vmem:[%s2558_s0 + $0x8] sm:$0xff] }
   0x4   :  { %1895 = vmatprep.subr.bf16.mxu0 %v1894_v4  ;;  %1904 = vmatpush3.bf16.msra.mxu1 %v1894_v4  ;;  %v186_v15 = vld [vmem:[%s2558_s0] sm:$0xff]  ;;  %v191_v18 = vld [vmem:[%s2558_s0 + $0x28] sm:$0xff]  ;;  %v188_v19 = vld [vmem:[%s2558_s0 + $0x10] sm:$0xff] }
   0x5   :  { %1897 = vmatpush3.bf16.msra.mxu0 %v1894_v4  ;;  %1905 = vmatprep.subr.bf16.mxu1 %v1950_v3  ;;  %v190_v16 = vld [vmem:[%s2558_s0 + $0x20] sm:$0xff]  ;;  %v192_v20 = vld [vmem:[%s2558_s0 + $0x30] sm:$0x3]  ;;  %v189_v21 = vld [vmem:[%s2558_s0 + $0x18] sm:$0xff] }
   0x6   :  { %1899 = vmatprep.subr.bf16.mxu0 %v1898_v7  ;;  %v1442_v22 = vld [vmem:[%s2558_s0 + $0x38] sm:$0xff]  ;;  %v1443_v23 = vld [vmem:[%s2558_s0 + $0x40] sm:$0xff]  ;;  %v1457_v24 = vld [vmem:[%s2558_s0 + $0x70] sm:$0xff] }
   0x7   :  { %v1444_v25 = vld [vmem:[%s2558_s0 + $0x48] sm:$0xff]  ;;  %v1458_v26 = vld [vmem:[%s2558_s0 + $0x78] sm:$0xff]  ;;  %v1445_v27 = vld [vmem:[%s2558_s0 + $0x50] sm:$0xff] }
   0x8   :  { %1907 = vmatpush3.bf16.msra.mxu1 %v1898_v7  ;;  %v1459_v28 = vld [vmem:[%s2558_s0 + $0x80] sm:$0xff]  ;;  %v1446_v29 = vld [vmem:[%s2558_s0 + $0x58] sm:$0xff]  ;;  %v1460_v30 = vld [vmem:[%s2558_s0 + $0x88] sm:$0xff] }
   0x9   :  { %1901 = vmatpush3.bf16.msra.mxu0 %v1898_v7  ;;  %1944 = vmatprep.subr.bf16.mxu1 %v1950_v3  ;;  %v1447_v31 = vld [vmem:[%s2558_s0 + $0x60] sm:$0xff]  ;;  %v1461_v32 = vld [vmem:[%s2558_s0 + $0x90] sm:$0xff]  ;;  %v1448_v33 = vld [vmem:[%s2558_s0 + $0x68] sm:$0x3] }
   0xa   :  { %1908 = vmatprep.subr.bf16.mxu0 %v1950_v3  ;;  %v1462_v34 = vld [vmem:[%s2558_s0 + $0x98] sm:$0xff]  ;;  %v1463_v35 = vld [vmem:[%s2558_s0 + $0xa0] sm:$0x3]  ;;  %v1472_v36 = vld [vmem:[%s2558_s0 + $0xa8] sm:$0xff] }
   0xb   :  { %1667 = vmatmul.mubr.msk.f32.vlgmr.msra.gmra.mrb[0].mxu1 %vm29_vm0, %v111_v10  ;;  %v1473_v37 = vld [vmem:[%s2558_s0 + $0xb0] sm:$0xff]  ;;  %v727_v38 = vld [vmem:[%s2559_s1] sm:$0xff]  ;;  %v1474_v39 = vld [vmem:[%s2558_s0 + $0xb8] sm:$0xff] }
   0xc   :  { %1656 = vmatmul.mubr.msk.f32.vlgmr.msra.gmra.mrb[0].mxu0 %vm29_vm0, %v24_v8  ;;  %1685 = vmatprep.mubr.msk.f32.mxu1 %vm1951_vm1, %v1952_v9  ;;  %v728_v40 = vld [vmem:[%s2559_s1 + $0x8] sm:$0xff]  ;;  %v1475_v41 = vld [vmem:[%s2558_s0 + $0xc0] sm:$0xff]  ;;  %v729_v42 = vld [vmem:[%s2559_s1 + $0x10] sm:$0xff] }
   0xd   :  { %1673 = vmatprep.mubr.msk.f32.mxu0 %vm1951_vm1, %v1952_v9  ;;  %v1476_v43 = vld [vmem:[%s2558_s0 + $0xc8] sm:$0xff]  ;;  %v730_v44 = vld [vmem:[%s2559_s1 + $0x18] sm:$0xff]  ;;  %v1477_v45 = vld [vmem:[%s2558_s0 + $0xd0] sm:$0xff] }
   0xe   :  { %v731_v46 = vld [vmem:[%s2559_s1 + $0x20] sm:$0xff]  ;;  %v1478_v47 = vld [vmem:[%s2558_s0 + $0xd8] sm:$0x3]  ;;  %v732_v48 = vld [vmem:[%s2559_s1 + $0x28] sm:$0xff] }
   0xf   :  { %v733_v49 = vld [vmem:[%s2559_s1 + $0x30] sm:$0x3]  ;;  %v1495_v50 = vld [vmem:[%s2559_s1 + $0x38] sm:$0xff]  ;;  %v1496_v51 = vld [vmem:[%s2559_s1 + $0x40] sm:$0xff] }
  0x10   :  { %v1510_v52 = vld [vmem:[%s2559_s1 + $0x70] sm:$0xff]  ;;  %v1497_v53 = vld [vmem:[%s2559_s1 + $0x48] sm:$0xff]  ;;  %v1511_v54 = vld [vmem:[%s2559_s1 + $0x78] sm:$0xff] }
  0x11   :  { %v1498_v55 = vld [vmem:[%s2559_s1 + $0x50] sm:$0xff]  ;;  %v1512_v56 = vld [vmem:[%s2559_s1 + $0x80] sm:$0xff]  ;;  %v1499_v59 = vld [vmem:[%s2559_s1 + $0x58] sm:$0xff] }
  0x12   :  { %v1513_v60 = vld [vmem:[%s2559_s1 + $0x88] sm:$0xff]  ;;  %v1500_v61 = vld [vmem:[%s2559_s1 + $0x60] sm:$0xff]  ;;  %v1514_v62 = vld [vmem:[%s2559_s1 + $0x90] sm:$0xff] }
  0x13   :  { %v1501_v63 = vld [vmem:[%s2559_s1 + $0x68] sm:$0x3]  ;;  %v1515_v0 = vld [vmem:[%s2559_s1 + $0x98] sm:$0xff]  ;;  %v1516_v1 = vld [vmem:[%s2559_s1 + $0xa0] sm:$0x3] }
  0x14   :  { %v1525_v2 = vld [vmem:[%s2559_s1 + $0xa8] sm:$0xff]  ;;  %v1540_v4 = vld [vmem:[%s2559_s1 + $0xe0] sm:$0xff]  ;;  %v1527_v5 = vld [vmem:[%s2559_s1 + $0xb8] sm:$0xff] }
  0x15   :  { %v1541_v6 = vld [vmem:[%s2559_s1 + $0xe8] sm:$0xff]  ;;  %v1528_v7 = vld [vmem:[%s2559_s1 + $0xc0] sm:$0xff]  ;;  %v1542_v8 = vld [vmem:[%s2559_s1 + $0xf0] sm:$0xff] }
  0x16   :  { %v1529_v10 = vld [vmem:[%s2559_s1 + $0xc8] sm:$0xff]  ;;  %v1544_v13 = vld [vmem:[%s2559_s1 + $0x100] sm:$0xff] }
  0xde   :  { %v2313_v57 = vpop.f32.mrb[0].mxu1 }
  0xdf   :  { %v1657_v11 = vpop.f32.mrb[0].mxu0  ;;  %v1668_v58 = vpop.f32.mrb[1].mxu1 }
  0xe0   :  { %v102_v12 = vpop.f32.mrb[1].mxu0 }
  0xe1   :  { %v2027_v14 = vpack.c.bf16 %v1657_v11, %v102_v12  ;;  %v1543_v11 = vld [vmem:[%s2559_s1 + $0xf8] sm:$0xff]  ;;  %v1530_v12 = vld [vmem:[%s2559_s1 + $0xd0] sm:$0xff] }
  0xe3   :  { %1911 = vmatpush3.bf16.msk.msra.mxu0 %vm2023_vm4, %v2027_v14  ;;  %1945 = vmatpush3.bf16.msk.msra.mxu1 %vm2023_vm4, %v2027_v14 }
  0xe4   :  { %1912 = vmatprep.subr.bf16.mxu1 %v1950_v3  ;;  %1916 = vmatprep.subr.bf16.mxu0 %v1950_v3 }
  0xe6   :  { %1674 = vmatmul.mubr.msk.f32.vlgmr.msra.gmra.mrb[2].mxu0 %vm193_vm5, %v186_v15  ;;  %1686 = vmatmul.mubr.msk.f32.vlgmr.msra.gmra.mrb[2].mxu1 %vm193_vm5, %v190_v16  ;;  %v1545_v15 = vld [vmem:[%s2559_s1 + $0x108] sm:$0xff]  ;;  %v1546_v16 = vld [vmem:[%s2559_s1 + $0x110] sm:$0x3] }
  0xe7   :  { %1915 = vmatpush3.bf16.msk.msra.mxu1 %vm2023_vm4, %v2027_v14  ;;  %1919 = vmatpush3.bf16.msk.msra.mxu0 %vm2023_vm4, %v2027_v14 }
  0xe8   :  { %1676 = vmatprep.mubr.msk.f32.mxu0 %vm1951_vm1, %v1952_v9  ;;  %1688 = vmatprep.mubr.msk.f32.mxu1 %vm1951_vm1, %v1952_v9 }
  0xe9   :  { %1920 = vmatprep.subr.bf16.mxu1 %v1950_v3  ;;  %1924 = vmatprep.subr.bf16.mxu0 %v1950_v3 }
  0xea   :  { %1677 = vmatmul.mubr.msk.f32.gmra.mrb[4].mxu0 %vm193_vm5, %v187_v17  ;;  %1689 = vmatmul.mubr.msk.f32.gmra.mrb[4].mxu1 %vm193_vm5, %v191_v18 }
  0xeb   :  { %1679 = vmatprep.mubr.msk.f32.mxu0 %vm1951_vm1, %v1952_v9  ;;  %1691 = vmatprep.mubr.msk.f32.mxu1 %vm1951_vm1, %v1952_v9 }
  0xee   :  { %1680 = vmatmul.mubr.msk.f32.gmra.mrb[6].mxu0 %vm193_vm5, %v188_v19  ;;  %1692 = vmatmul.mubr.msk.f32.gmra.mrb[6].mxu1 %vm193_vm5, %v192_v20 }
  0xef   :  { %1682 = vmatprep.mubr.msk.f32.mxu0 %vm1951_vm1, %v1952_v9  ;;  %1698 = vmatprep.mubr.msk.f32.mxu1 %vm1951_vm1, %v1952_v9 }
  0xf2   :  { %1683 = vmatmul.mubr.msk.f32.gmra.mrb[8].mxu0 %vm193_vm5, %v189_v21  ;;  %1699 = vmatmul.mubr.msk.f32.vlgmr.msra.gmra.mrb[8].mxu1 %vm193_vm5, %v1442_v22 }
  0xf3   :  { %1923 = vmatpush3.bf16.msk.msra.mxu1 %vm2023_vm4, %v2027_v14  ;;  %1701 = vmatprep.mubr.msk.f32.mxu1 %vm1951_vm1, %v1952_v9 }
  0xf4   :  { %1723 = vmatprep.mubr.msk.f32.mxu0 %vm1951_vm1, %v1952_v9  ;;  %1928 = vmatprep.subr.bf16.mxu1 %v1950_v3 }
  0xf6   :  { %1702 = vmatmul.mubr.msk.f32.gmra.mrb[10].mxu1 %vm193_vm5, %v1443_v23  ;;  %1724 = vmatmul.mubr.msk.f32.vlgmr.msra.gmra.mrb[10].mxu0 %vm193_vm5, %v1457_v24 }
  0xf7   :  { %1927 = vmatpush3.bf16.msk.msra.mxu0 %vm2023_vm4, %v2027_v14  ;;  %1704 = vmatprep.mubr.msk.f32.mxu1 %vm1951_vm1, %v1952_v9 }
  0xf8   :  { %1726 = vmatprep.mubr.msk.f32.mxu0 %vm1951_vm1, %v1952_v9  ;;  %1932 = vmatprep.subr.bf16.mxu0 %v1950_v3 }
  0xfa   :  { %1705 = vmatmul.mubr.msk.f32.gmra.mrb[12].mxu1 %vm193_vm5, %v1444_v25  ;;  %1727 = vmatmul.mubr.msk.f32.gmra.mrb[12].mxu0 %vm193_vm5, %v1458_v26 }
  0xfb   :  { %1707 = vmatprep.mubr.msk.f32.mxu1 %vm1951_vm1, %v1952_v9  ;;  %1729 = vmatprep.mubr.msk.f32.mxu0 %vm1951_vm1, %v1952_v9 }
  0xfe   :  { %1708 = vmatmul.mubr.msk.f32.gmra.mrb[14].mxu1 %vm193_vm5, %v1445_v27  ;;  %1730 = vmatmul.mubr.msk.f32.gmra.mrb[14].mxu0 %vm193_vm5, %v1459_v28 }
  0xff   :  { %1710 = vmatprep.mubr.msk.f32.mxu1 %vm1951_vm1, %v1952_v9  ;;  %1732 = vmatprep.mubr.msk.f32.mxu0 %vm1951_vm1, %v1952_v9 }
 0x102   :  { %1711 = vmatmul.mubr.msk.f32.gmra.mrb[16].mxu1 %vm193_vm5, %v1446_v29  ;;  %1733 = vmatmul.mubr.msk.f32.gmra.mrb[16].mxu0 %vm193_vm5, %v1460_v30 }
 0x103   :  { %1713 = vmatprep.mubr.msk.f32.mxu1 %vm1951_vm1, %v1952_v9  ;;  %1735 = vmatprep.mubr.msk.f32.mxu0 %vm1951_vm1, %v1952_v9 }
 0x106   :  { %1714 = vmatmul.mubr.msk.f32.gmra.mrb[18].mxu1 %vm193_vm5, %v1447_v31  ;;  %1736 = vmatmul.mubr.msk.f32.gmra.mrb[18].mxu0 %vm193_vm5, %v1461_v32 }
 0x107   :  { %1716 = vmatprep.mubr.msk.f32.mxu1 %vm1951_vm1, %v1952_v9  ;;  %1738 = vmatprep.mubr.msk.f32.mxu0 %vm1951_vm1, %v1952_v9 }
 0x10a   :  { %1717 = vmatmul.mubr.msk.f32.gmra.mrb[20].mxu1 %vm193_vm5, %v1448_v33  ;;  %1739 = vmatmul.mubr.msk.f32.gmra.mrb[20].mxu0 %vm193_vm5, %v1462_v34 }
 0x10b   :  { %1741 = vmatprep.mubr.msk.f32.mxu0 %vm1951_vm1, %v1952_v9  ;;  %1748 = vmatprep.mubr.msk.f32.mxu1 %vm1951_vm1, %v1952_v9 }
 0x10e   :  { %1742 = vmatmul.mubr.msk.f32.gmra.mrb[22].mxu0 %vm193_vm5, %v1463_v35  ;;  %1749 = vmatmul.mubr.msk.f32.vlgmr.msra.gmra.mrb[22].mxu1 %vm193_vm5, %v1472_v36 }
 0x10f   :  { %1931 = vmatpush3.bf16.msk.msra.mxu1 %vm2023_vm4, %v2027_v14  ;;  %1751 = vmatprep.mubr.msk.f32.mxu1 %vm1951_vm1, %v1952_v9 }
 0x110   :  { %1773 = vmatprep.mubr.msk.f32.mxu0 %vm1951_vm1, %v1952_v9  ;;  %1936 = vmatprep.subr.bf16.mxu1 %v1950_v3 }
 0x112   :  { %1752 = vmatmul.mubr.msk.f32.gmra.mrb[24].mxu1 %vm193_vm5, %v1473_v37  ;;  %1774 = vmatmul.mubr.msk.f32.vlgmr.msra.gmra.mrb[24].mxu0 %vm193_vm5, %v727_v38 }
 0x113   :  { %1935 = vmatpush3.bf16.msk.msra.mxu0 %vm2023_vm4, %v2027_v14  ;;  %1754 = vmatprep.mubr.msk.f32.mxu1 %vm1951_vm1, %v1952_v9 }
 0x114   :  { %1776 = vmatprep.mubr.msk.f32.mxu0 %vm1951_vm1, %v1952_v9  ;;  %1940 = vmatprep.subr.bf16.mxu0 %v1950_v3  ;;  %v1526_v3 = vld [vmem:[%s2559_s1 + $0xb0] sm:$0xff] }
 0x116   :  { %1755 = vmatmul.mubr.msk.f32.gmra.mrb[26].mxu1 %vm193_vm5, %v1474_v39  ;;  %1777 = vmatmul.mubr.msk.f32.gmra.mrb[26].mxu0 %vm193_vm5, %v728_v40 }
 0x117   :  { %1757 = vmatprep.mubr.msk.f32.mxu1 %vm1951_vm1, %v1952_v9  ;;  %1779 = vmatprep.mubr.msk.f32.mxu0 %vm1951_vm1, %v1952_v9 }
 0x11a   :  { %1758 = vmatmul.mubr.msk.f32.gmra.mrb[28].mxu1 %vm193_vm5, %v1475_v41  ;;  %1780 = vmatmul.mubr.msk.f32.gmra.mrb[28].mxu0 %vm193_vm5, %v729_v42 }
 0x11b   :  { %1760 = vmatprep.mubr.msk.f32.mxu1 %vm1951_vm1, %v1952_v9  ;;  %1782 = vmatprep.mubr.msk.f32.mxu0 %vm1951_vm1, %v1952_v9 }
 0x11e   :  { %1761 = vmatmul.mubr.msk.f32.gmra.mrb[30].mxu1 %vm193_vm5, %v1476_v43  ;;  %1783 = vmatmul.mubr.msk.f32.gmra.mrb[30].mxu0 %vm193_vm5, %v730_v44 }
 0x11f   :  { %1763 = vmatprep.mubr.msk.f32.mxu1 %vm1951_vm1, %v1952_v9  ;;  %1785 = vmatprep.mubr.msk.f32.mxu0 %vm1951_vm1, %v1952_v9 }
 0x122   :  { %1764 = vmatmul.mubr.msk.f32.gmra.mrb[32].mxu1 %vm193_vm5, %v1477_v45  ;;  %1786 = vmatmul.mubr.msk.f32.gmra.mrb[32].mxu0 %vm193_vm5, %v731_v46 }
 0x123   :  { %1766 = vmatprep.mubr.msk.f32.mxu1 %vm1951_vm1, %v1952_v9  ;;  %1788 = vmatprep.mubr.msk.f32.mxu0 %vm1951_vm1, %v1952_v9 }
 0x126   :  { %1767 = vmatmul.mubr.msk.f32.gmra.mrb[34].mxu1 %vm193_vm5, %v1478_v47  ;;  %1789 = vmatmul.mubr.msk.f32.gmra.mrb[34].mxu0 %vm193_vm5, %v732_v48 }
 0x127   :  { %1791 = vmatprep.mubr.msk.f32.mxu0 %vm1951_vm1, %v1952_v9  ;;  %1798 = vmatprep.mubr.msk.f32.mxu1 %vm1951_vm1, %v1952_v9 }
 0x12a   :  { %1792 = vmatmul.mubr.msk.f32.gmra.mrb[36].mxu0 %vm193_vm5, %v733_v49  ;;  %1799 = vmatmul.mubr.msk.f32.vlgmr.msra.gmra.mrb[36].mxu1 %vm193_vm5, %v1495_v50 }
 0x12b   :  { %1939 = vmatpush3.bf16.msk.msra.mxu1 %vm2023_vm4, %v2027_v14  ;;  %1801 = vmatprep.mubr.msk.f32.mxu1 %vm1951_vm1, %v1952_v9 }
 0x12c   :  { %1823 = vmatprep.mubr.msk.f32.mxu0 %vm1951_vm1, %v1952_v9 }
 0x12e   :  { %1802 = vmatmul.mubr.msk.f32.gmra.mrb[38].mxu1 %vm193_vm5, %v1496_v51  ;;  %1824 = vmatmul.mubr.msk.f32.vlgmr.msra.gmra.mrb[38].mxu0 %vm193_vm5, %v1510_v52 }
 0x12f   :  { %1943 = vmatpush3.bf16.msk.msra.mxu0 %vm2023_vm4, %v2027_v14  ;;  %1804 = vmatprep.mubr.msk.f32.mxu1 %vm1951_vm1, %v1952_v9  ;;  %v1531_v14 = vld [vmem:[%s2559_s1 + $0xd8] sm:$0x3] }
 0x130   :  { %1826 = vmatprep.mubr.msk.f32.mxu0 %vm1951_vm1, %v1952_v9 }
 0x132   :  { %1805 = vmatmul.mubr.msk.f32.gmra.mrb[40].mxu1 %vm193_vm5, %v1497_v53  ;;  %1827 = vmatmul.mubr.msk.f32.gmra.mrb[40].mxu0 %vm193_vm5, %v1511_v54 }
 0x133   :  { %1807 = vmatprep.mubr.msk.f32.mxu1 %vm1951_vm1, %v1952_v9  ;;  %1829 = vmatprep.mubr.msk.f32.mxu0 %vm1951_vm1, %v1952_v9 }
 0x136   :  { %1808 = vmatmul.mubr.msk.f32.gmra.mrb[42].mxu1 %vm193_vm5, %v1498_v55  ;;  %1830 = vmatmul.mubr.msk.f32.gmra.mrb[42].mxu0 %vm193_vm5, %v1512_v56 }
 0x137   :  { %1810 = vmatprep.mubr.msk.f32.mxu1 %vm1951_vm1, %v1952_v9  ;;  %1832 = vmatprep.mubr.msk.f32.mxu0 %vm1951_vm1, %v1952_v9 }
 0x13a   :  { %1811 = vmatmul.mubr.msk.f32.gmra.mrb[44].mxu1 %vm193_vm5, %v1499_v59  ;;  %1833 = vmatmul.mubr.msk.f32.gmra.mrb[44].mxu0 %vm193_vm5, %v1513_v60 }
 0x13b   :  { %1813 = vmatprep.mubr.msk.f32.mxu1 %vm1951_vm1, %v1952_v9  ;;  %1835 = vmatprep.mubr.msk.f32.mxu0 %vm1951_vm1, %v1952_v9 }
 0x13e   :  { %1814 = vmatmul.mubr.msk.f32.gmra.mrb[46].mxu1 %vm193_vm5, %v1500_v61  ;;  %1836 = vmatmul.mubr.msk.f32.gmra.mrb[46].mxu0 %vm193_vm5, %v1514_v62 }
 0x13f   :  { %1816 = vmatprep.mubr.msk.f32.mxu1 %vm1951_vm1, %v1952_v9  ;;  %1838 = vmatprep.mubr.msk.f32.mxu0 %vm1951_vm1, %v1952_v9 }
 0x142   :  { %1817 = vmatmul.mubr.msk.f32.gmra.mrb[48].mxu1 %vm193_vm5, %v1501_v63  ;;  %1839 = vmatmul.mubr.msk.f32.gmra.mrb[48].mxu0 %vm193_vm5, %v1515_v0 }
 0x143   :  { %1841 = vmatprep.mubr.msk.f32.mxu0 %vm1951_vm1, %v1952_v9  ;;  %1848 = vmatprep.mubr.msk.f32.mxu1 %vm1951_vm1, %v1952_v9 }
 0x146   :  { %1842 = vmatmul.mubr.msk.f32.gmra.mrb[50].mxu0 %vm193_vm5, %v1516_v1  ;;  %1849 = vmatmul.mubr.msk.f32.vlgmr.msra.gmra.mrb[50].mxu1 %vm193_vm5, %v1525_v2 }
 0x147   :  { %1851 = vmatprep.mubr.msk.f32.mxu1 %vm1951_vm1, %v1952_v9  ;;  %1873 = vmatprep.mubr.msk.f32.mxu0 %vm1951_vm1, %v1952_v9 }
 0x14a   :  { %1852 = vmatmul.mubr.msk.f32.gmra.mrb[52].mxu1 %vm193_vm5, %v1526_v3  ;;  %1874 = vmatmul.mubr.msk.f32.vlgmr.msra.gmra.mrb[52].mxu0 %vm193_vm5, %v1540_v4 }
 0x14b   :  { %1854 = vmatprep.mubr.msk.f32.mxu1 %vm1951_vm1, %v1952_v9  ;;  %1876 = vmatprep.mubr.msk.f32.mxu0 %vm1951_vm1, %v1952_v9 }
 0x14e   :  { %1855 = vmatmul.mubr.msk.f32.gmra.mrb[54].mxu1 %vm193_vm5, %v1527_v5  ;;  %1877 = vmatmul.mubr.msk.f32.gmra.mrb[54].mxu0 %vm193_vm5, %v1541_v6 }
 0x14f   :  { %1857 = vmatprep.mubr.msk.f32.mxu1 %vm1951_vm1, %v1952_v9  ;;  %1879 = vmatprep.mubr.msk.f32.mxu0 %vm1951_vm1, %v1952_v9 }
 0x152   :  { %1858 = vmatmul.mubr.msk.f32.gmra.mrb[56].mxu1 %vm193_vm5, %v1528_v7  ;;  %1880 = vmatmul.mubr.msk.f32.gmra.mrb[56].mxu0 %vm193_vm5, %v1542_v8 }
 0x153   :  { %1860 = vmatprep.mubr.msk.f32.mxu1 %vm1951_vm1, %v1952_v9  ;;  %1882 = vmatprep.mubr.msk.f32.mxu0 %vm1951_vm1, %v1952_v9 }
 0x156   :  { %1861 = vmatmul.mubr.msk.f32.gmra.mrb[58].mxu1 %vm193_vm5, %v1529_v10  ;;  %1883 = vmatmul.mubr.msk.f32.gmra.mrb[58].mxu0 %vm193_vm5, %v1543_v11 }
 0x157   :  { %1863 = vmatprep.mubr.msk.f32.mxu1 %vm1951_vm1, %v1952_v9  ;;  %1885 = vmatprep.mubr.msk.f32.mxu0 %vm1951_vm1, %v1952_v9 }
 0x15a   :  { %1864 = vmatmul.mubr.msk.f32.gmra.mrb[60].mxu1 %vm193_vm5, %v1530_v12  ;;  %1886 = vmatmul.mubr.msk.f32.gmra.mrb[60].mxu0 %vm193_vm5, %v1544_v13 }
 0x15b   :  { %1866 = vmatprep.mubr.msk.f32.mxu1 %vm1951_vm1, %v1952_v9  ;;  %1888 = vmatprep.mubr.msk.f32.mxu0 %vm1951_vm1, %v1952_v9 }
 0x15e   :  { %1867 = vmatmul.mubr.msk.f32.gmra.mrb[62].mxu1 %vm193_vm5, %v1531_v14  ;;  %1889 = vmatmul.mubr.msk.f32.gmra.mrb[62].mxu0 %vm193_vm5, %v1545_v15 }
 0x15f   :  { %1891 = vmatprep.mubr.msk.f32.mxu0 %vm1951_vm1, %v1952_v9 }
 0x162   :  { %1892 = vmatmul.mubr.msk.f32.gmra.mrb[64].mxu0 %vm193_vm5, %v1546_v16 }
 0x1b9   :  { %v285_v17 = vpop.f32.mrb[2].mxu0  ;;  %v2443_v18 = vpop.f32.mrb[2].mxu1 }
 0x1ba   :  { %v1675_v19 = vpop.f32.mrb[3].mxu0  ;;  %v1687_v20 = vpop.f32.mrb[3].mxu1 }
 0x1bd   :  { %v290_v21 = vpop.f32.mrb[4].mxu0  ;;  %v2445_v22 = vpop.f32.mrb[4].mxu1 }
 0x1be   :  { %v1678_v23 = vpop.f32.mrb[5].mxu0  ;;  %v1690_v24 = vpop.f32.mrb[5].mxu1 }
 0x1c1   :  { %v295_v25 = vpop.f32.mrb[6].mxu0  ;;  %v2447_v26 = vpop.f32.mrb[6].mxu1 }
 0x1c2   :  { %v1681_v9 = vpop.f32.mrb[7].mxu0  ;;  %v1693_v27 = vpop.f32.mrb[7].mxu1 }
 0x1c5   :  { %v300_v28 = vpop.f32.mrb[8].mxu0  ;;  %v414_v29 = vpop.f32.mrb[8].mxu1 }
 0x1c6   :  { %v706_v30 = vmax.f32 %v285_v17, %v414_v29  ;;  %v1684_v31 = vpop.f32.mrb[9].mxu0  ;;  %v1700_v32 = vpop.f32.mrb[9].mxu1 }
 0x1c9   :  { %v419_v33 = vpop.f32.mrb[10].mxu1  ;;  %v543_v34 = vpop.f32.mrb[10].mxu0 }
 0x1ca   :  { %v707_v35 = vmax.f32 %v290_v21, %v419_v33  ;;  %v1703_v36 = vpop.f32.mrb[11].mxu1  ;;  %v1725_v37 = vpop.f32.mrb[11].mxu0 }
 0x1cd   :  { %v424_v38 = vpop.f32.mrb[12].mxu1  ;;  %v548_v39 = vpop.f32.mrb[12].mxu0 }
 0x1ce   :  { %v708_v40 = vmax.f32 %v295_v25, %v424_v38  ;;  %v1706_v41 = vpop.f32.mrb[13].mxu1  ;;  %v1728_v42 = vpop.f32.mrb[13].mxu0 }
 0x1d1   :  { %v429_v43 = vpop.f32.mrb[14].mxu1  ;;  %v553_v44 = vpop.f32.mrb[14].mxu0 }
 0x1d2   :  { %v709_v45 = vmax.f32 %v300_v28, %v429_v43  ;;  %v1709_v46 = vpop.f32.mrb[15].mxu1  ;;  %v1731_v47 = vpop.f32.mrb[15].mxu0 }
 0x1d5   :  { %v434_v48 = vpop.f32.mrb[16].mxu1  ;;  %v558_v49 = vpop.f32.mrb[16].mxu0 }
 0x1d6   :  { %v710_v50 = vmax.f32 %v2443_v18, %v434_v48  ;;  %v1712_v51 = vpop.f32.mrb[17].mxu1  ;;  %v1734_v52 = vpop.f32.mrb[17].mxu0 }
 0x1d9   :  { %v439_v53 = vpop.f32.mrb[18].mxu1  ;;  %v563_v54 = vpop.f32.mrb[18].mxu0 }
 0x1da   :  { %v711_v55 = vmax.f32 %v2445_v22, %v439_v53  ;;  %v1715_v56 = vpop.f32.mrb[19].mxu1  ;;  %v1737_v58 = vpop.f32.mrb[19].mxu0 }
 0x1dd   :  { %v444_v59 = vpop.f32.mrb[20].mxu1  ;;  %v568_v60 = vpop.f32.mrb[20].mxu0 }
 0x1de   :  { %v712_v61 = vmax.f32 %v2447_v26, %v444_v59  ;;  %v1718_v62 = vpop.f32.mrb[21].mxu1  ;;  %v1740_v63 = vpop.f32.mrb[21].mxu0 }
 0x1e1   :  { %v573_v0 = vpop.f32.mrb[22].mxu0  ;;  %v672_v1 = vpop.f32.mrb[22].mxu1 }
 0x1e2   :  { %v713_v2 = vmax.f32 %v543_v34, %v672_v1  ;;  %v1743_v3 = vpop.f32.mrb[23].mxu0  ;;  %v1750_v4 = vpop.f32.mrb[23].mxu1 }
 0x1e4   :  { %v2452_v5 = vmax.f32 %v706_v30, %v713_v2 }
 0x1e5   :  { %v677_v6 = vpop.f32.mrb[24].mxu1  ;;  %v2454_v7 = vpop.f32.mrb[24].mxu0 }
 0x1e6   :  { %v714_v8 = vmax.f32 %v548_v39, %v677_v6  ;;  %v1753_v10 = vpop.f32.mrb[25].mxu1  ;;  %v1775_v11 = vpop.f32.mrb[25].mxu0 }
 0x1e7   :  { %v1407_v11 = vlaneseq }
 0x1e8   :  { %v2456_v12 = vmax.f32 %v707_v35, %v714_v8 }
 0x1e9   :  { %v682_v13 = vpop.f32.mrb[26].mxu1  ;;  %v2458_v14 = vpop.f32.mrb[26].mxu0 }
 0x1ea   :  { %v715_v15 = vmax.f32 %v553_v44, %v682_v13  ;;  %v1756_v16 = vpop.f32.mrb[27].mxu1  ;;  %v1778_v17 = vpop.f32.mrb[27].mxu0  ;;  %v112_v13 = vld [vmem:[%s2560_s5] sm:$0x1] }
 0x1ec   :  { %v2460_v18 = vmax.f32 %v708_v40, %v715_v15 }
 0x1ed   :  { %v687_v19 = vpop.f32.mrb[28].mxu1  ;;  %v2462_v20 = vpop.f32.mrb[28].mxu0 }
 0x1ee   :  { %v716_v21 = vmax.f32 %v558_v49, %v687_v19  ;;  %v1759_v22 = vpop.f32.mrb[29].mxu1  ;;  %v1781_v23 = vpop.f32.mrb[29].mxu0 }
 0x1f0   :  { %v2464_v24 = vmax.f32 %v709_v45, %v716_v21  ;;  %v1408_v21 = vshrl.u32 %v1407_v11, 7 }
 0x1f1   :  { %v692_v25 = vpop.f32.mrb[30].mxu1  ;;  %v2466_v26 = vpop.f32.mrb[30].mxu0 }
 0x1f2   :  { %v717_v9 = vmax.f32 %v563_v54, %v692_v25  ;;  %v1762_v27 = vpop.f32.mrb[31].mxu1  ;;  %v1784_v28 = vpop.f32.mrb[31].mxu0 }
 0x1f3   :  { %v1409_v28 = vsub.s32 0, %v1408_v21 }
 0x1f4   :  { %v2468_v29 = vmax.f32 %v710_v50, %v717_v9 }
 0x1f5   :  { %v697_v30 = vpop.f32.mrb[32].mxu1  ;;  %v2470_v31 = vpop.f32.mrb[32].mxu0 }
 0x1f6   :  { %v718_v32 = vmax.f32 %v568_v60, %v697_v30  ;;  %v1765_v33 = vpop.f32.mrb[33].mxu1  ;;  %v1787_v34 = vpop.f32.mrb[33].mxu0 }
 0x1f8   :  { %v2472_v35 = vmax.f32 %v711_v55, %v718_v32 }
 0x1f9   :  { %v702_v36 = vpop.f32.mrb[34].mxu1  ;;  %v2474_v37 = vpop.f32.mrb[34].mxu0 }
 0x1fa   :  { %v719_v38 = vmax.f32 %v573_v0, %v702_v36  ;;  %v1768_v39 = vpop.f32.mrb[35].mxu1  ;;  %v1790_v40 = vpop.f32.mrb[35].mxu0 }
 0x1fc   :  { %v2476_v41 = vmax.f32 %v712_v61, %v719_v38 }
 0x1fd   :  { %v2478_v42 = vpop.f32.mrb[36].mxu0  ;;  %v950_v43 = vpop.f32.mrb[36].mxu1 }
 0x1fe   :  { %v1371_v44 = vmax.f32 %v2454_v7, %v950_v43  ;;  %v1793_v45 = vpop.f32.mrb[37].mxu0  ;;  %v1800_v46 = vpop.f32.mrb[37].mxu1 }
 0x201   :  { %v955_v47 = vpop.f32.mrb[38].mxu1  ;;  %v1079_v48 = vpop.f32.mrb[38].mxu0 }
 0x202   :  { %v1372_v49 = vmax.f32 %v2458_v14, %v955_v47  ;;  %v1803_v50 = vpop.f32.mrb[39].mxu1  ;;  %v1825_v51 = vpop.f32.mrb[39].mxu0 }
 0x205   :  { %v960_v52 = vpop.f32.mrb[40].mxu1  ;;  %v1084_v53 = vpop.f32.mrb[40].mxu0 }
 0x206   :  { %v1373_v54 = vmax.f32 %v2462_v20, %v960_v52  ;;  %v1806_v55 = vpop.f32.mrb[41].mxu1  ;;  %v1828_v56 = vpop.f32.mrb[41].mxu0  ;;  %v183_v20 = vadd.f32 %v2313_v57, %v112_v13 }
 0x208   :  { %v1406_v27 = vmul.f32 2.0, %v183_v20 }
 0x209   :  { %v2483_v58 = vpop.f32.mrb[42].mxu1  ;;  %v1089_v59 = vpop.f32.mrb[42].mxu0 }
 0x20a   :  { %v1374_v60 = vmax.f32 %v2466_v26, %v2483_v58  ;;  %v1809_v61 = vpop.f32.mrb[43].mxu1  ;;  %v1831_v62 = vpop.f32.mrb[43].mxu0  ;;  %v1410_v40 = vrot.slane %v1406_v27, %v1409_v28 }
 0x20d   :  { %v2487_v63 = vpop.f32.mrb[44].mxu1  ;;  %v1094_v0 = vpop.f32.mrb[44].mxu0 }
 0x20e   :  { %v1375_v1 = vmax.f32 %v2470_v31, %v2487_v63  ;;  %v1812_v2 = vpop.f32.mrb[45].mxu1  ;;  %v1834_v3 = vpop.f32.mrb[45].mxu0 }
 0x211   :  { %v2491_v4 = vpop.f32.mrb[46].mxu1  ;;  %v2493_v6 = vpop.f32.mrb[46].mxu0 }
 0x212   :  { %v1376_v7 = vmax.f32 %v2474_v37, %v2491_v4  ;;  %v1815_v8 = vpop.f32.mrb[47].mxu1  ;;  %v1837_v10 = vpop.f32.mrb[47].mxu0 }
 0x215   :  { %v2500_v14 = vpop.f32.mrb[48].mxu1  ;;  %v2502_v15 = vpop.f32.mrb[48].mxu0 }
 0x216   :  { %v1377_v16 = vmax.f32 %v2478_v42, %v2500_v14  ;;  %v1818_v17 = vpop.f32.mrb[49].mxu1  ;;  %v1840_v19 = vpop.f32.mrb[49].mxu0 }
 0x219   :  { %v2507_v22 = vpop.f32.mrb[50].mxu0  ;;  %v1208_v23 = vpop.f32.mrb[50].mxu1 }
 0x21a   :  { %v1378_v25 = vmax.f32 %v1079_v48, %v1208_v23  ;;  %v1843_v26 = vpop.f32.mrb[51].mxu0  ;;  %v1850_v9 = vpop.f32.mrb[51].mxu1 }
 0x21c   :  { %v1385_v30 = vmax.f32 %v1371_v44, %v1378_v25 }
 0x21d   :  { %v1213_v32 = vpop.f32.mrb[52].mxu1  ;;  %v1337_v33 = vpop.f32.mrb[52].mxu0 }
 0x21e   :  { %v1379_v34 = vmax.f32 %v1084_v53, %v1213_v32  ;;  %v1392_v36 = vmax.f32 %v1385_v30, %v1337_v33  ;;  %v1853_v38 = vpop.f32.mrb[53].mxu1  ;;  %v1875_v39 = vpop.f32.mrb[53].mxu0 }
 0x220   :  { %v1399_v43 = vadd.f32 %v1392_v36, %v2452_v5  ;;  %v1386_v57 = vmax.f32 %v1372_v49, %v1379_v34 }
 0x221   :  { %v1218_v45 = vpop.f32.mrb[54].mxu1  ;;  %v1342_v46 = vpop.f32.mrb[54].mxu0 }
 0x222   :  { %v1411_v47 = vadd.f32 %v1410_v40, %v1399_v43  ;;  %v1380_v48 = vmax.f32 %v1089_v59, %v1218_v45  ;;  %v1393_v50 = vmax.f32 %v1386_v57, %v1342_v46  ;;  %v1856_v51 = vpop.f32.mrb[55].mxu1  ;;  %v1878_v52 = vpop.f32.mrb[55].mxu0 }
 0x224   :  { %1419 = vst.msk [vmem:[%s2561_s6] sm:$0xff] %vm1418_vm6, %v1411_v47  ;;  %v1400_v44 = vadd.f32 %v1393_v50, %v2456_v12  ;;  %v1387_v53 = vmax.f32 %v1373_v54, %v1380_v48 }
 0x225   :  { %v1223_v55 = vpop.f32.mrb[56].mxu1  ;;  %v1347_v56 = vpop.f32.mrb[56].mxu0 }
 0x226   :  { %v1412_v5 = vadd.f32 %v1410_v40, %v1400_v44  ;;  %v1381_v49 = vmax.f32 %v1094_v0, %v1223_v55  ;;  %v1394_v58 = vmax.f32 %v1387_v53, %v1347_v56  ;;  %v1859_v61 = vpop.f32.mrb[57].mxu1  ;;  %v1881_v62 = vpop.f32.mrb[57].mxu0 }
 0x228   :  { %1420 = vst.msk [vmem:[%s2561_s6 + $0x8] sm:$0xff] %vm1418_vm6, %v1412_v5  ;;  %v1401_v59 = vadd.f32 %v1394_v58, %v2460_v18  ;;  %v1388_v2 = vmax.f32 %v1374_v60, %v1381_v49 }
 0x229   :  { %v1228_v3 = vpop.f32.mrb[58].mxu1  ;;  %v1352_v8 = vpop.f32.mrb[58].mxu0 }
 0x22a   :  { %v1413_v10 = vadd.f32 %v1410_v40, %v1401_v59  ;;  %v1382_v12 = vmax.f32 %v2493_v6, %v1228_v3  ;;  %v1395_v54 = vmax.f32 %v1388_v2, %v1352_v8  ;;  %v1862_v11 = vpop.f32.mrb[59].mxu1  ;;  %v1884_v13 = vpop.f32.mrb[59].mxu0 }
 0x22c   :  { %1421 = vst.msk [vmem:[%s2561_s6 + $0x10] sm:$0xff] %vm1418_vm6, %v1413_v10  ;;  %v1402_v0 = vadd.f32 %v1395_v54, %v2464_v24  ;;  %v1389_v18 = vmax.f32 %v1375_v1, %v1382_v12 }
 0x22d   :  { %v1233_v60 = vpop.f32.mrb[60].mxu1  ;;  %v1357_v17 = vpop.f32.mrb[60].mxu0 }
 0x22e   :  { %v1414_v19 = vadd.f32 %v1410_v40, %v1402_v0  ;;  %v1383_v20 = vmax.f32 %v2502_v15, %v1233_v60  ;;  %v1396_v6 = vmax.f32 %v1389_v18, %v1357_v17  ;;  %v1865_v21 = vpop.f32.mrb[61].mxu1  ;;  %v1887_v23 = vpop.f32.mrb[61].mxu0 }
 0x230   :  { %1422 = vst.msk [vmem:[%s2561_s6 + $0x18] sm:$0xff] %vm1418_vm6, %v1414_v19  ;;  %v1403_v25 = vadd.f32 %v1396_v6, %v2468_v29  ;;  %v1390_v24 = vmax.f32 %v1376_v7, %v1383_v20 }
 0x231   :  { %v1238_v31 = vpop.f32.mrb[62].mxu1  ;;  %v1362_v63 = vpop.f32.mrb[62].mxu0 }
 0x232   :  { %v1415_v1 = vadd.f32 %v1410_v40, %v1403_v25  ;;  %v1384_v26 = vmax.f32 %v2507_v22, %v1238_v31  ;;  %v1397_v15 = vmax.f32 %v1390_v24, %v1362_v63  ;;  %v1868_v9 = vpop.f32.mrb[63].mxu1  ;;  %v1890_v27 = vpop.f32.mrb[63].mxu0 }
 0x234   :  { %1423 = vst.msk [vmem:[%s2561_s6 + $0x20] sm:$0xff] %vm1418_vm6, %v1415_v1  ;;  %v1404_v28 = vadd.f32 %v1397_v15, %v2472_v35  ;;  %v1391_v29 = vmax.f32 %v1377_v16, %v1384_v26 }
 0x235   :  { %v1367_v37 = vpop.f32.mrb[64].mxu0 }
 0x236   :  { %v1416_v4 = vadd.f32 %v1410_v40, %v1404_v28  ;;  %v1398_v7 = vmax.f32 %v1391_v29, %v1367_v37  ;;  %v1893_v30 = vpop.f32.mrb[65].mxu0 }
 0x238   :  { %1424 = vst.msk [vmem:[%s2561_s6 + $0x28] sm:$0xff] %vm1418_vm6, %v1416_v4  ;;  %v1405_v22 = vadd.f32 %v1398_v7, %v2476_v41 }
 0x23a   :  { %v1417_v32 = vadd.f32 %v1410_v40, %v1405_v22 }
 0x23c   :  { %1426 = vst.msk [vmem:[%s2561_s6 + $0x30] sm:$0x3] %vm1425_vm7, %v1417_v32 }

</bundles_post_ra>
